<compile_context>
chip_gen: v7x
topology: tpu7x:2x2x1
jax: 0.10.0
libtpu: 0.0.40
codegen_flags: <defaults>
</compile_context>

<pallas_src>
import jax
import jax.numpy as jnp
from jax.experimental import pallas as pl
from jax.experimental.pallas import tpu as pltpu


TB = 8  # batch tile (f32 sublane count)


def _round_up(n, m):
    return ((n + m - 1) // m) * m


def bgu_kernel(x_ref, wc_ref, w1_ref, b1_ref, w2_ref, b2_ref, o_ref):
    # x_ref : (TB, C, Kp)   f32 activations, K on lanes
    # wc_ref: (TB, 1, C)    bf16 1x1-conv weight, replicated across the batch tile
    # w1_ref: (Kp, K2p)     bf16 fc1 weight (pre-transposed, zero-padded)
    # b1_ref: (1, K2p)      f32
    # w2_ref: (K2p, Kp)     bf16 fc2 weight (pre-transposed, zero-padded)
    # b2_ref: (1, Kp)       f32
    # o_ref : (TB, Kp)      f32 gate output
    x = x_ref[...].astype(jnp.bfloat16)                      # (TB, C, Kp)
    wc = wc_ref[...]                                         # (TB, 1, C)

    # 1x1 conv with a single output channel == contraction over C on the MXU.
    h = jnp.einsum(
        "boc,bck->bok", wc, x, preferred_element_type=jnp.float32
    )[:, 0, :]                                               # (TB, Kp) f32
    h = jnp.maximum(h, 0.0)                                  # ReLU (conv ReLU; the
                                                             # extra torch.relu is idempotent)

    # fc1 / fc2: bf16 MXU inputs, f32 accumulation, f32 bias add.
    h1 = jnp.dot(h.astype(jnp.bfloat16), w1_ref[...],
                 preferred_element_type=jnp.float32) + b1_ref[...]   # (TB, K2p)
    h2 = jnp.dot(h1.astype(jnp.bfloat16), w2_ref[...],
                 preferred_element_type=jnp.float32) + b2_ref[...]   # (TB, Kp)

    # TODO(synk): Gumbel(config) source is not provided; implementing the
    # deterministic eval-mode Gumbel-sigmoid gate (sigmoid, tau=1, no noise).
    o_ref[...] = jax.nn.sigmoid(h2)


def init_params(key, in_channels, k):
    """Deterministic synthetic parameters in PyTorch layout."""
    k2 = -(-k // 2)  # ceil(k / 2)
    kc, k1w, k1b, k2w, k2b = jax.random.split(key, 5)
    wc = jax.random.normal(kc, (1, in_channels, 1, 1), jnp.float32) * 0.05
    w1 = jax.random.normal(k1w, (k2, k), jnp.float32) * 0.1
    b1 = jax.random.normal(k1b, (k2,), jnp.float32) * 0.01
    w2 = jax.random.normal(k2w, (k, k2), jnp.float32) * 0.1
    b2 = jax.random.normal(k2b, (k,), jnp.float32) * 0.01
    return wc, w1, b1, w2, b2


def prepare_params(raw_params):
    """One-time prep: transpose fc weights, zero-pad to lane-dense shapes, bf16 MXU operands."""
    wc, w1, b1, w2, b2 = raw_params
    K2, K = w1.shape
    C = wc.shape[1]
    Kp = _round_up(K, 128)
    K2p = _round_up(K2, 128)

    wc_p = jnp.broadcast_to(
        wc.reshape(1, 1, C).astype(jnp.bfloat16), (TB, 1, C)
    )                                                                  # (TB, 1, C)
    w1_p = jnp.zeros((Kp, K2p), jnp.bfloat16).at[:K, :K2].set(
        w1.T.astype(jnp.bfloat16))                                     # (Kp, K2p)
    b1_p = jnp.zeros((1, K2p), jnp.float32).at[0, :K2].set(
        b1.astype(jnp.float32))                                        # (1, K2p)
    w2_p = jnp.zeros((K2p, Kp), jnp.bfloat16).at[:K2, :K].set(
        w2.T.astype(jnp.bfloat16))                                     # (K2p, Kp)
    b2_p = jnp.zeros((1, Kp), jnp.float32).at[0, :K].set(
        b2.astype(jnp.float32))                                        # (1, Kp)
    return (wc_p, w1_p, b1_p, w2_p, b2_p), (K, K2, Kp, K2p)


def binary_gate_unit_forward(x_nchw, prepared):
    """x_nchw: (B, C, H, W) float32 with H*W == k. Returns (B, 1, k, 1)."""
    (wc_p, w1_p, b1_p, w2_p, b2_p), (K, K2, Kp, K2p) = prepared
    B, C, H, W = x_nchw.shape
    assert H * W == K
    Bp = _round_up(B, TB)

    # Contiguous NCHW flatten — no transpose; K stays on lanes inside the kernel.
    x_bck = x_nchw.reshape(B, C, K)
    x_pad = jnp.pad(x_bck, ((0, Bp - B), (0, 0), (0, Kp - K)))

    out = pl.pallas_call(
        bgu_kernel,
        out_shape=jax.ShapeDtypeStruct((Bp, Kp), jnp.float32),
        grid_spec=pltpu.PrefetchScalarGridSpec(
            num_scalar_prefetch=0,
            grid=(Bp // TB,),
            in_specs=[
                pl.BlockSpec((TB, C, Kp), lambda i: (i, 0, 0)),   # x tile
                pl.BlockSpec((TB, 1, C), lambda i: (0, 0, 0)),    # conv weight
                pl.BlockSpec((Kp, K2p), lambda i: (0, 0)),        # fc1 weight
                pl.BlockSpec((1, K2p), lambda i: (0, 0)),         # fc1 bias
                pl.BlockSpec((K2p, Kp), lambda i: (0, 0)),        # fc2 weight
                pl.BlockSpec((1, Kp), lambda i: (0, 0)),          # fc2 bias
            ],
            out_specs=pl.BlockSpec((TB, Kp), lambda i: (i, 0)),
        ),
        compiler_params=pltpu.CompilerParams(
            dimension_semantics=("parallel",),   # shard batch tiles across TCs (v7x)
            vmem_limit_bytes=32 * 1024 * 1024,   # fits all generations incl. v7x 64MiB
        ),
    )(x_pad, wc_p, w1_p, b1_p, w2_p, b2_p)

    # Slice away lane / sublane padding in plain JAX.
    return out[:B, :K].reshape(B, 1, K, 1)


def bgu_reference(x_nchw, raw_params):
    """Pure-JAX f32 reference of the PyTorch forward (eval-mode sigmoid gate)."""
    wc, w1, b1, w2, b2 = raw_params
    B, C, H, W = x_nchw.shape
    K = H * W
    h = jnp.einsum("bchw,c->bhw", x_nchw, wc.reshape(C)).reshape(B, K)
    h = jnp.maximum(h, 0.0)
    h = jnp.maximum(h, 0.0)          # duplicate ReLU of the original module (idempotent)
    h1 = h @ w1.T + b1
    h2 = h1 @ w2.T + b2
    return jax.nn.sigmoid(h2).reshape(B, 1, K, 1)


if __name__ == "__main__":
    # Small shapes consistent with the module (k = H*W = 100, the module default k).
    B, C, H, W = 2, 32, 10, 10
    K = H * W

    key = jax.random.PRNGKey(0)
    kx, kp = jax.random.split(key)
    x = jax.random.normal(kx, (B, C, H, W), jnp.float32)

    raw_params = init_params(kp, C, K)
    prepared = prepare_params(raw_params)   # one-time transpose/pad/cast

    fwd = jax.jit(lambda xx: binary_gate_unit_forward(xx, prepared))
    y = jax.block_until_ready(fwd(x))

    assert y.shape == (B, 1, K, 1), y.shape
    assert bool(jnp.all(jnp.isfinite(y)))

    y_ref = bgu_reference(x, raw_params)
    max_err = float(jnp.max(jnp.abs(y - y_ref)))
    assert max_err < 2e-2, max_err   # bf16 MXU inputs, f32 accumulation

    print("KERNEL_OK")
</pallas_src>

<mosaic_0001>
module attributes {stable_mosaic.version = 11 : i64} {
  func.func @bgu_kernel(%arg0: i32, %arg1: memref<8x32x128xf32, #tpu.memory_space<vmem>>, %arg2: memref<8x1x32xbf16, #tpu.memory_space<vmem>>, %arg3: memref<128x128xbf16, #tpu.memory_space<vmem>>, %arg4: memref<1x128xf32, #tpu.memory_space<vmem>>, %arg5: memref<128x128xbf16, #tpu.memory_space<vmem>>, %arg6: memref<1x128xf32, #tpu.memory_space<vmem>>, %arg7: memref<8x128xf32, #tpu.memory_space<vmem>>) attributes {dimension_semantics = [#tpu.dimension_semantics<parallel>], iteration_bounds = array<i64: 1>, scalar_prefetch = 0 : i64, scratch_operands = 0 : i64, tpu.core_type = #tpu.core_type<tc>, window_params = [{transform_indices = @transform_0, window_bounds = array<i64: 8, 32, 128>}, {pipeline_mode = #tpu.pipeline_mode<synchronous>, transform_indices = @transform_1, window_bounds = array<i64: 8, 1, 32>}, {pipeline_mode = #tpu.pipeline_mode<synchronous>, transform_indices = @transform_2, window_bounds = array<i64: 128, 128>}, {pipeline_mode = #tpu.pipeline_mode<synchronous>, transform_indices = @transform_3, window_bounds = array<i64: 1, 128>}, {pipeline_mode = #tpu.pipeline_mode<synchronous>, transform_indices = @transform_4, window_bounds = array<i64: 128, 128>}, {pipeline_mode = #tpu.pipeline_mode<synchronous>, transform_indices = @transform_5, window_bounds = array<i64: 1, 128>}, {transform_indices = @transform_6, window_bounds = array<i64: 8, 128>}]} {
    %c0 = arith.constant 0 : index
    %c0_0 = arith.constant 0 : index
    %c0_1 = arith.constant 0 : index
    %0 = vector.load %arg1[%c0, %c0_0, %c0_1] : memref<8x32x128xf32, #tpu.memory_space<vmem>>, vector<8x32x128xf32>
    %1 = arith.truncf %0 : vector<8x32x128xf32> to vector<8x32x128xbf16>
    %c0_2 = arith.constant 0 : index
    %c0_3 = arith.constant 0 : index
    %c0_4 = arith.constant 0 : index
    %2 = vector.load %arg2[%c0_2, %c0_3, %c0_4] : memref<8x1x32xbf16, #tpu.memory_space<vmem>>, vector<8x1x32xbf16>
    "tpu.trace_start"() <{level = 10 : i32, message = "boc,bck->bok"}> : () -> ()
    %cst = arith.constant dense<0.000000e+00> : vector<8x1x128xf32>
    %3 = tpu.matmul %2, %1, %cst {dimension_numbers = #tpu.dot_dimension_numbers<[2], [1], [1], [2], [0, 0, 0, 1, 1, 2], [0], [0]>} : vector<8x1x32xbf16>, vector<8x32x128xbf16>, vector<8x1x128xf32> -> vector<8x1x128xf32>
    "tpu.trace_stop"() : () -> ()
    %4 = vector.shape_cast %3 : vector<8x1x128xf32> to vector<8x128xf32>
    %cst_5 = arith.constant 0.000000e+00 : f32
    %5 = vector.broadcast %cst_5 : f32 to vector<8x128xf32>
    %6 = arith.maximumf %4, %5 : vector<8x128xf32>
    %7 = arith.truncf %6 : vector<8x128xf32> to vector<8x128xbf16>
    %c0_6 = arith.constant 0 : index
    %c0_7 = arith.constant 0 : index
    %8 = vector.load %arg3[%c0_6, %c0_7] : memref<128x128xbf16, #tpu.memory_space<vmem>>, vector<128x128xbf16>
    %cst_8 = arith.constant dense<0.000000e+00> : vector<8x128xf32>
    %9 = tpu.matmul %7, %8, %cst_8 {dimension_numbers = #tpu.dot_dimension_numbers<[1], [0], [0], [1], [0, 0, 1, 1], [], []>} : vector<8x128xbf16>, vector<128x128xbf16>, vector<8x128xf32> -> vector<8x128xf32>
    %c0_9 = arith.constant 0 : index
    %c0_10 = arith.constant 0 : index
    %10 = vector.load %arg4[%c0_9, %c0_10] : memref<1x128xf32, #tpu.memory_space<vmem>>, vector<1x128xf32>
    %11 = vector.broadcast %10 : vector<1x128xf32> to vector<8x128xf32>
    %12 = arith.addf %9, %11 : vector<8x128xf32>
    %13 = arith.truncf %12 : vector<8x128xf32> to vector<8x128xbf16>
    %c0_11 = arith.constant 0 : index
    %c0_12 = arith.constant 0 : index
    %14 = vector.load %arg5[%c0_11, %c0_12] : memref<128x128xbf16, #tpu.memory_space<vmem>>, vector<128x128xbf16>
    %cst_13 = arith.constant dense<0.000000e+00> : vector<8x128xf32>
    %15 = tpu.matmul %13, %14, %cst_13 {dimension_numbers = #tpu.dot_dimension_numbers<[1], [0], [0], [1], [0, 0, 1, 1], [], []>} : vector<8x128xbf16>, vector<128x128xbf16>, vector<8x128xf32> -> vector<8x128xf32>
    %c0_14 = arith.constant 0 : index
    %c0_15 = arith.constant 0 : index
    %16 = vector.load %arg6[%c0_14, %c0_15] : memref<1x128xf32, #tpu.memory_space<vmem>>, vector<1x128xf32>
    %17 = vector.broadcast %16 : vector<1x128xf32> to vector<8x128xf32>
    %18 = arith.addf %15, %17 : vector<8x128xf32>
    %19 = arith.negf %18 : vector<8x128xf32>
    %20 = math.exp %19 : vector<8x128xf32>
    %cst_16 = arith.constant 1.000000e+00 : f32
    %21 = vector.broadcast %cst_16 : f32 to vector<8x128xf32>
    %22 = arith.addf %21, %20 : vector<8x128xf32>
    %23 = arith.divf %21, %22 : vector<8x128xf32>
    %c0_17 = arith.constant 0 : index
    %c0_18 = arith.constant 0 : index
    %24 = vector.load %arg7[%c0_17, %c0_18] : memref<8x128xf32, #tpu.memory_space<vmem>>, vector<8x128xf32>
    tpu.vector_store %arg7[%c0_17, %c0_18], %23 {strides = array<i32>} : memref<8x128xf32, #tpu.memory_space<vmem>>, vector<8x128xf32>,
    return
  }
  func.func @transform_0(%arg0: i32) -> (i32, i32, i32) {
    %c0_i32 = arith.constant 0 : i32
    %c0_i32_0 = arith.constant 0 : i32
    %c0_i32_1 = arith.constant 0 : i32
    return %arg0, %c0_i32, %c0_i32_0 : i32, i32, i32
  }
  func.func @transform_1(%arg0: i32) -> (i32, i32, i32) {
    %c0_i32 = arith.constant 0 : i32
    %c0_i32_0 = arith.constant 0 : i32
    %c0_i32_1 = arith.constant 0 : i32
    %c0_i32_2 = arith.constant 0 : i32
    return %c0_i32, %c0_i32_0, %c0_i32_1 : i32, i32, i32
  }
  func.func @transform_2(%arg0: i32) -> (i32, i32) {
    %c0_i32 = arith.constant 0 : i32
    %c0_i32_0 = arith.constant 0 : i32
    %c0_i32_1 = arith.constant 0 : i32
    return %c0_i32, %c0_i32_0 : i32, i32
  }
  func.func @transform_3(%arg0: i32) -> (i32, i32) {
    %c0_i32 = arith.constant 0 : i32
    %c0_i32_0 = arith.constant 0 : i32
    %c0_i32_1 = arith.constant 0 : i32
    return %c0_i32, %c0_i32_0 : i32, i32
  }
  func.func @transform_4(%arg0: i32) -> (i32, i32) {
    %c0_i32 = arith.constant 0 : i32
    %c0_i32_0 = arith.constant 0 : i32
    %c0_i32_1 = arith.constant 0 : i32
    return %c0_i32, %c0_i32_0 : i32, i32
  }
  func.func @transform_5(%arg0: i32) -> (i32, i32) {
    %c0_i32 = arith.constant 0 : i32
    %c0_i32_0 = arith.constant 0 : i32
    %c0_i32_1 = arith.constant 0 : i32
    return %c0_i32, %c0_i32_0 : i32, i32
  }
  func.func @transform_6(%arg0: i32) -> (i32, i32) {
    %c0_i32 = arith.constant 0 : i32
    %c0_i32_0 = arith.constant 0 : i32
    return %arg0, %c0_i32 : i32, i32
  }
}

</mosaic_0001>

<bundles_post_ra>
// kernel: _lambda_.1
= control target key start
LH: loop header
LB: loop body
LE: loop exit
PB: predicated region body
PF: predicated region fallthrough
CT: control target
= control target key end

     0   :  { %v909_v0 = vmov 0.0   ;;  %vm910_vm0 = vmmov 0   ;;  %vm80_vm1 = vcmask 261120   ;;  %vm481_vm2 = vcmask 1041409   ;;  %s1183_s0 = inlined_call_operand.vmem [shape: f32[8,32,128], index: 0, kind: input, shape index: {}]   ;;  %s1184_s1 = inlined_call_operand.vmem [shape: bf16[8,1,32], index: 1, kind: input, shape index: {}]   ;;  %s1185_s2 = inlined_call_operand.vmem [shape: bf16[128,128], index: 2, kind: input, shape index: {}]   ;;  %s1186_s4 = inlined_call_operand.vmem [shape: bf16[128,128], index: 4, kind: input, shape index: {}]   ;;  %s1187_s3 = inlined_call_operand.vmem [shape: f32[1,128], index: 3, kind: input, shape index: {}]   ;;  %s1188_s5 = inlined_call_operand.vmem [shape: f32[1,128], index: 5, kind: input, shape index: {}]   ;;  %s1189_s6 = inlined_call_operand.vmem [shape: f32[8,128], index: 6, kind: output, shape index: {}]  }
   0x1   :  { %783 = vmatprep.subr.bf16.mxu0 %v909_v0  ;;  %791 = vmatprep.subr.bf16.mxu1 %v909_v0  ;;  %v24_v1 = vld [vmem:[%s1183_s0] sm:$0xff]  ;;  %v25_v2 = vld [vmem:[%s1183_s0 + $0x8] sm:$0xff]  ;;  %v26_v6 = vld [vmem:[%s1183_s0 + $0x10] sm:$0xff]  ;;  %vm484_vm3 = vcmask 1042434   ;;  %vm487_vm4 = vcmask 1043459   ;;  %vm490_vm5 = vcmask 1044484  }
   0x2   :  { %v28_v3 = vld [vmem:[%s1183_s0 + $0x20] sm:$0xff]  ;;  %v56_v4 = vpack.c.bf16 %v25_v2, %v24_v1  ;;  %v29_v5 = vld [vmem:[%s1183_s0 + $0x28] sm:$0xff]  ;;  %v27_v7 = vld [vmem:[%s1183_s0 + $0x18] sm:$0xff]  ;;  %787 = vmatprep.mubr.msk.bf16.mxu0 %vm910_vm0, %v909_v0  ;;  %795 = vmatprep.mubr.msk.bf16.mxu1 %vm910_vm0, %v909_v0  ;;  %vm493_vm6 = vcmask 1045509   ;;  %vm496_vm7 = vcmask 1046534   ;;  %vm499_vm8 = vcmask 1047559  }
   0x3   :  { %v58_v8 = vpack.c.bf16 %v29_v5, %v28_v3  ;;  %v30_v9 = vld [vmem:[%s1183_s0 + $0x30] sm:$0xff]  ;;  %v31_v10 = vld [vmem:[%s1183_s0 + $0x38] sm:$0xff]  ;;  %v57_v11 = vpack.c.bf16 %v27_v7, %v26_v6  ;;  %v32_v13 = vld [vmem:[%s1183_s0 + $0x40] sm:$0xff] }
   0x4   :  { %784 = vmatpush3.bf16.msra.mxu0 %v56_v4  ;;  %v59_v12 = vpack.c.bf16 %v31_v10, %v30_v9  ;;  %v33_v14 = vld [vmem:[%s1183_s0 + $0x48] sm:$0xff]  ;;  %v36_v15 = vld [vmem:[%s1183_s0 + $0x60] sm:$0xff]  ;;  %v34_v21 = vld [vmem:[%s1183_s0 + $0x50] sm:$0xff] }
   0x5   :  { %792 = vmatpush3.bf16.msra.mxu1 %v58_v8  ;;  %785 = vmatprep.subr.bf16.mxu0 %v909_v0  ;;  %v37_v16 = vld [vmem:[%s1183_s0 + $0x68] sm:$0xff]  ;;  %v72_v17 = vld [vmem:[%s1184_s1] sm:$0x1]  ;;  %v60_v18 = vpack.c.bf16 %v33_v14, %v32_v13  ;;  %v73_v19 = vld [vmem:[%s1184_s1 + $0x1] sm:$0x1] }
   0x6   :  { %793 = vmatprep.subr.bf16.mxu1 %v909_v0  ;;  %v62_v20 = vpack.c.bf16 %v37_v16, %v36_v15  ;;  %v35_v22 = vld [vmem:[%s1183_s0 + $0x58] sm:$0xff]  ;;  %v38_v23 = vld [vmem:[%s1183_s0 + $0x70] sm:$0xff]  ;;  %v40_v27 = vld [vmem:[%s1183_s0 + $0x80] sm:$0xff] }
   0x7   :  { %v39_v24 = vld [vmem:[%s1183_s0 + $0x78] sm:$0xff]  ;;  %v61_v25 = vpack.c.bf16 %v35_v22, %v34_v21  ;;  %v41_v28 = vld [vmem:[%s1183_s0 + $0x88] sm:$0xff]  ;;  %v44_v29 = vld [vmem:[%s1183_s0 + $0xa0] sm:$0xff] }
   0x8   :  { %786 = vmatpush3.bf16.msra.mxu0 %v57_v11  ;;  %v63_v26 = vpack.c.bf16 %v39_v24, %v38_v23  ;;  %v45_v30 = vld [vmem:[%s1183_s0 + $0xa8] sm:$0xff]  ;;  %v74_v31 = vld [vmem:[%s1184_s1 + $0x2] sm:$0x1]  ;;  %v64_v32 = vpack.c.bf16 %v41_v28, %v40_v27  ;;  %v75_v33 = vld [vmem:[%s1184_s1 + $0x3] sm:$0x1] }
   0x9   :  { %794 = vmatpush3.bf16.msra.mxu1 %v59_v12  ;;  %799 = vmatprep.subr.bf16.mxu0 %v909_v0  ;;  %v66_v34 = vpack.c.bf16 %v45_v30, %v44_v29  ;;  %v42_v35 = vld [vmem:[%s1183_s0 + $0x90] sm:$0xff]  ;;  %v43_v36 = vld [vmem:[%s1183_s0 + $0x98] sm:$0xff]  ;;  %v48_v41 = vld [vmem:[%s1183_s0 + $0xc0] sm:$0xff] }
   0xa   :  { %807 = vmatprep.subr.bf16.mxu1 %v909_v0  ;;  %v46_v37 = vld [vmem:[%s1183_s0 + $0xb0] sm:$0xff]  ;;  %v47_v38 = vld [vmem:[%s1183_s0 + $0xb8] sm:$0xff]  ;;  %v65_v39 = vpack.c.bf16 %v43_v36, %v42_v35  ;;  %v49_v42 = vld [vmem:[%s1183_s0 + $0xc8] sm:$0xff] }
   0xb   :  { %788 = vmatmul.mubr.msk.bf16.vlgmr.msra.gmra.mrb[0].mxu0 %vm80_vm1, %v72_v17  ;;  %v67_v40 = vpack.c.bf16 %v47_v38, %v46_v37  ;;  %v52_v43 = vld [vmem:[%s1183_s0 + $0xe0] sm:$0xff]  ;;  %v53_v44 = vld [vmem:[%s1183_s0 + $0xe8] sm:$0xff]  ;;  %v68_v46 = vpack.c.bf16 %v49_v42, %v48_v41  ;;  %v50_v49 = vld [vmem:[%s1183_s0 + $0xd0] sm:$0xff] }
   0xc   :  { %796 = vmatmul.mubr.msk.bf16.vlgmr.msra.gmra.mrb[0].mxu1 %vm80_vm1, %v73_v19  ;;  %800 = vmatpush3.bf16.msra.mxu0 %v60_v18  ;;  %v76_v45 = vld [vmem:[%s1184_s1 + $0x4] sm:$0x1]  ;;  %v77_v47 = vld [vmem:[%s1184_s1 + $0x5] sm:$0x1]  ;;  %v70_v48 = vpack.c.bf16 %v53_v44, %v52_v43  ;;  %v51_v50 = vld [vmem:[%s1183_s0 + $0xd8] sm:$0xff] }
   0xd   :  { %808 = vmatpush3.bf16.msra.mxu1 %v62_v20  ;;  %801 = vmatprep.subr.bf16.mxu0 %v909_v0  ;;  %v54_v51 = vld [vmem:[%s1183_s0 + $0xf0] sm:$0xff]  ;;  %v55_v52 = vld [vmem:[%s1183_s0 + $0xf8] sm:$0xff]  ;;  %v69_v53 = vpack.c.bf16 %v51_v50, %v50_v49  ;;  %v78_v55 = vld [vmem:[%s1184_s1 + $0x6] sm:$0x1] }
   0xe   :  { %809 = vmatprep.subr.bf16.mxu1 %v909_v0  ;;  %803 = vmatprep.mubr.msk.bf16.mxu0 %vm910_vm0, %v909_v0  ;;  %v71_v54 = vpack.c.bf16 %v55_v52, %v54_v51  ;;  %v79_v56 = vld [vmem:[%s1184_s1 + $0x7] sm:$0x1]  ;;  %v890_v58 = vld [vmem:[%s1185_s2 + $0x8] sm:$0xff]   ;;  %v891_v59 = vld [vmem:[%s1185_s2 + $0x10] sm:$0xff]  }
   0xf   :  { %811 = vmatprep.mubr.msk.bf16.mxu1 %vm910_vm0, %v909_v0  ;;  %v889_v57 = vld [vmem:[%s1185_s2] sm:$0xff]   ;;  %v892_v60 = vld [vmem:[%s1185_s2 + $0x18] sm:$0xff]   ;;  %v894_v62 = vld [vmem:[%s1185_s2 + $0x28] sm:$0xff]  }
  0x10   :  { %802 = vmatpush3.bf16.msra.mxu0 %v61_v25  ;;  %v893_v61 = vld [vmem:[%s1185_s2 + $0x20] sm:$0xff]   ;;  %v895_v63 = vld [vmem:[%s1185_s2 + $0x30] sm:$0xff]   ;;  %v896_v1 = vld [vmem:[%s1185_s2 + $0x38] sm:$0xff]  }
  0x11   :  { %810 = vmatpush3.bf16.msra.mxu1 %v63_v26  ;;  %815 = vmatprep.subr.bf16.mxu0 %v909_v0  ;;  %v897_v2 = vld [vmem:[%s1186_s4] sm:$0xff]   ;;  %v898_v3 = vld [vmem:[%s1186_s4 + $0x8] sm:$0xff]   ;;  %v899_v4 = vld [vmem:[%s1186_s4 + $0x10] sm:$0xff]  }
  0x12   :  { %823 = vmatprep.subr.bf16.mxu1 %v909_v0  ;;  %v900_v5 = vld [vmem:[%s1186_s4 + $0x18] sm:$0xff]   ;;  %v901_v6 = vld [vmem:[%s1186_s4 + $0x20] sm:$0xff]   ;;  %v902_v7 = vld [vmem:[%s1186_s4 + $0x28] sm:$0xff]  }
  0x13   :  { %804 = vmatmul.mubr.msk.bf16.vlgmr.msra.gmra.mrb[4].mxu0 %vm80_vm1, %v74_v31  ;;  %v903_v8 = vld [vmem:[%s1186_s4 + $0x30] sm:$0xff]  }
  0x14   :  { %812 = vmatmul.mubr.msk.bf16.vlgmr.msra.gmra.mrb[4].mxu1 %vm80_vm1, %v75_v33  ;;  %816 = vmatpush3.bf16.msra.mxu0 %v64_v32 }
  0x15   :  { %824 = vmatpush3.bf16.msra.mxu1 %v66_v34  ;;  %817 = vmatprep.subr.bf16.mxu0 %v909_v0 }
  0x16   :  { %825 = vmatprep.subr.bf16.mxu1 %v909_v0  ;;  %819 = vmatprep.mubr.msk.bf16.mxu0 %vm910_vm0, %v909_v0 }
  0x17   :  { %827 = vmatprep.mubr.msk.bf16.mxu1 %vm910_vm0, %v909_v0 }
  0x18   :  { %818 = vmatpush3.bf16.msra.mxu0 %v65_v39 }
  0x19   :  { %826 = vmatpush3.bf16.msra.mxu1 %v67_v40  ;;  %831 = vmatprep.subr.bf16.mxu0 %v909_v0 }
  0x1a   :  { %839 = vmatprep.subr.bf16.mxu1 %v909_v0 }
  0x1b   :  { %820 = vmatmul.mubr.msk.bf16.vlgmr.msra.gmra.mrb[8].mxu0 %vm80_vm1, %v76_v45 }
  0x1c   :  { %828 = vmatmul.mubr.msk.bf16.vlgmr.msra.gmra.mrb[8].mxu1 %vm80_vm1, %v77_v47  ;;  %832 = vmatpush3.bf16.msra.mxu0 %v68_v46 }
  0x1d   :  { %840 = vmatpush3.bf16.msra.mxu1 %v70_v48  ;;  %833 = vmatprep.subr.bf16.mxu0 %v909_v0 }
  0x1e   :  { %841 = vmatprep.subr.bf16.mxu1 %v909_v0  ;;  %835 = vmatprep.mubr.msk.bf16.mxu0 %vm910_vm0, %v909_v0 }
  0x1f   :  { %843 = vmatprep.mubr.msk.bf16.mxu1 %vm910_vm0, %v909_v0 }
  0x20   :  { %834 = vmatpush3.bf16.msra.mxu0 %v69_v53 }
  0x21   :  { %842 = vmatpush3.bf16.msra.mxu1 %v71_v54  ;;  %847 = vmatprep.subr.bf16.mxu0 %v909_v0 }
  0x22   :  { %867 = vmatprep.subr.bf16.mxu1 %v909_v0 }
  0x23   :  { %836 = vmatmul.mubr.msk.bf16.vlgmr.msra.gmra.mrb[12].mxu0 %vm80_vm1, %v78_v55 }
  0x24   :  { %844 = vmatmul.mubr.msk.bf16.vlgmr.msra.gmra.mrb[12].mxu1 %vm80_vm1, %v79_v56  ;;  %863 = vmatprep.mubr.msk.bf16.mxu0 %vm910_vm0, %v909_v0 }
  0x25   :  { %883 = vmatprep.mubr.msk.bf16.mxu1 %vm910_vm0, %v909_v0  ;;  %848 = vmatpush3.bf16.msra.mxu0 %v889_v57 }
  0x26   :  { %849 = vmatprep.subr.bf16.mxu0 %v909_v0  ;;  %868 = vmatpush3.bf16.msra.mxu1 %v897_v2 }
  0x27   :  { %869 = vmatprep.subr.bf16.mxu1 %v909_v0 }
  0x29   :  { %850 = vmatpush3.bf16.msra.mxu0 %v890_v58 }
  0x2a   :  { %851 = vmatprep.subr.bf16.mxu0 %v909_v0  ;;  %870 = vmatpush3.bf16.msra.mxu1 %v898_v3 }
  0x2b   :  { %871 = vmatprep.subr.bf16.mxu1 %v909_v0 }
  0x2d   :  { %852 = vmatpush3.bf16.msra.mxu0 %v891_v59 }
  0x2e   :  { %853 = vmatprep.subr.bf16.mxu0 %v909_v0  ;;  %872 = vmatpush3.bf16.msra.mxu1 %v899_v4 }
  0x2f   :  { %873 = vmatprep.subr.bf16.mxu1 %v909_v0 }
  0x31   :  { %854 = vmatpush3.bf16.msra.mxu0 %v892_v60 }
  0x32   :  { %855 = vmatprep.subr.bf16.mxu0 %v909_v0  ;;  %874 = vmatpush3.bf16.msra.mxu1 %v900_v5 }
  0x33   :  { %875 = vmatprep.subr.bf16.mxu1 %v909_v0 }
  0x35   :  { %856 = vmatpush3.bf16.msra.mxu0 %v893_v61 }
  0x36   :  { %857 = vmatprep.subr.bf16.mxu0 %v909_v0  ;;  %876 = vmatpush3.bf16.msra.mxu1 %v901_v6 }
  0x37   :  { %877 = vmatprep.subr.bf16.mxu1 %v909_v0 }
  0x39   :  { %858 = vmatpush3.bf16.msra.mxu0 %v894_v62 }
  0x3a   :  { %859 = vmatprep.subr.bf16.mxu0 %v909_v0  ;;  %878 = vmatpush3.bf16.msra.mxu1 %v902_v7 }
  0x3b   :  { %879 = vmatprep.subr.bf16.mxu1 %v909_v0 }
  0x3d   :  { %860 = vmatpush3.bf16.msra.mxu0 %v895_v63 }
  0x3e   :  { %861 = vmatprep.subr.bf16.mxu0 %v909_v0  ;;  %880 = vmatpush3.bf16.msra.mxu1 %v903_v8 }
  0x3f   :  { %881 = vmatprep.subr.bf16.mxu1 %v909_v0 }
  0x41   :  { %862 = vmatpush3.bf16.msra.mxu0 %v896_v1 }
  0xde   :  { %v118_v9 = vpop.f32.mrb[0].mxu0 }
  0xdf   :  { %v425_v10 = vmax.f32 %v118_v9, 0.0  ;;  %v161_v11 = vpop.f32.mrb[0].mxu1  ;;  %v789_v12 = vpop.f32.mrb[1].mxu0 }
  0xe0   :  { %v426_v13 = vmax.f32 %v161_v11, 0.0  ;;  %v797_v14 = vpop.f32.mrb[1].mxu1  ;;  %v121_v15 = vpop.f32.mrb[2].mxu0 }
  0xe1   :  { %v164_v16 = vpop.f32.mrb[2].mxu1  ;;  %v790_v17 = vpop.f32.mrb[3].mxu0  ;;  %v433_v18 = vpack.c.bf16 %v425_v10, %v425_v10 }
  0xe2   :  { %v434_v19 = vpack.c.bf16 %v426_v13, %v426_v13  ;;  %v798_v20 = vpop.f32.mrb[3].mxu1  ;;  %v904_v16 = vld [vmem:[%s1186_s4 + $0x38] sm:$0xff]   ;;  %v722_v17 = vld [vmem:[%s1187_s3] ss:$0 sm:$0xff] }
  0xe3   :  { %v472_v22 = vunpack.c.l.b16 %v433_v18  ;;  %882 = vmatpush3.bf16.msra.mxu1 %v904_v16 }
  0xe4   :  { %v473_v21 = vunpack.c.l.b16 %v434_v19 }
  0xe6   :  { %v480_v23 = vrot.slane %v473_v21, 7  ;;  %v204_v24 = vpop.f32.mrb[4].mxu0 }
  0xe7   :  { %v427_v25 = vmax.f32 %v204_v24, 0.0  ;;  %v247_v26 = vpop.f32.mrb[4].mxu1  ;;  %v805_v0 = vpop.f32.mrb[5].mxu0  ;;  %v731_v24 = vld [vmem:[%s1188_s5] ss:$0 sm:$0xff] }
  0xe8   :  { %v482_v27 = vsel %vm481_vm2, %v480_v23, %v472_v22  ;;  %v428_v28 = vmax.f32 %v247_v26, 0.0  ;;  %v813_v29 = vpop.f32.mrb[5].mxu1  ;;  %v207_v30 = vpop.f32.mrb[6].mxu0 }
  0xe9   :  { %v435_v31 = vpack.c.bf16 %v427_v25, %v427_v25  ;;  %v250_v32 = vpop.f32.mrb[6].mxu1  ;;  %v806_v33 = vpop.f32.mrb[7].mxu0 }
  0xea   :  { %v436_v34 = vpack.c.bf16 %v428_v28, %v428_v28  ;;  %v814_v35 = vpop.f32.mrb[7].mxu1 }
  0xeb   :  { %v474_v36 = vunpack.c.l.b16 %v435_v31 }
  0xec   :  { %v475_v37 = vunpack.c.l.b16 %v436_v34 }
  0xed   :  { %v483_v38 = vrot.slane %v474_v36, 6 }
  0xee   :  { %v486_v39 = vrot.slane %v475_v37, 5  ;;  %v290_v40 = vpop.f32.mrb[8].mxu0 }
  0xef   :  { %v485_v41 = vsel %vm484_vm3, %v483_v38, %v482_v27  ;;  %v429_v42 = vmax.f32 %v290_v40, 0.0  ;;  %v333_v43 = vpop.f32.mrb[8].mxu1  ;;  %v821_v44 = vpop.f32.mrb[9].mxu0 }
  0xf0   :  { %v488_v45 = vsel %vm487_vm4, %v486_v39, %v485_v41  ;;  %v430_v46 = vmax.f32 %v333_v43, 0.0  ;;  %v829_v47 = vpop.f32.mrb[9].mxu1  ;;  %v293_v48 = vpop.f32.mrb[10].mxu0 }
  0xf1   :  { %v437_v49 = vpack.c.bf16 %v429_v42, %v429_v42  ;;  %v336_v50 = vpop.f32.mrb[10].mxu1  ;;  %v822_v51 = vpop.f32.mrb[11].mxu0 }
  0xf2   :  { %v438_v52 = vpack.c.bf16 %v430_v46, %v430_v46  ;;  %v830_v53 = vpop.f32.mrb[11].mxu1 }
  0xf3   :  { %v476_v54 = vunpack.c.l.b16 %v437_v49 }
  0xf4   :  { %v477_v55 = vunpack.c.l.b16 %v438_v52 }
  0xf5   :  { %v489_v56 = vrot.slane %v476_v54, 4 }
  0xf6   :  { %v492_v57 = vrot.slane %v477_v55, 3  ;;  %v376_v58 = vpop.f32.mrb[12].mxu0 }
  0xf7   :  { %v491_v59 = vsel %vm490_vm5, %v489_v56, %v488_v45  ;;  %v431_v60 = vmax.f32 %v376_v58, 0.0  ;;  %v419_v61 = vpop.f32.mrb[12].mxu1  ;;  %v837_v62 = vpop.f32.mrb[13].mxu0 }
  0xf8   :  { %v494_v63 = vsel %vm493_vm6, %v492_v57, %v491_v59  ;;  %v432_v1 = vmax.f32 %v419_v61, 0.0  ;;  %v845_v2 = vpop.f32.mrb[13].mxu1  ;;  %v379_v3 = vpop.f32.mrb[14].mxu0 }
  0xf9   :  { %v439_v4 = vpack.c.bf16 %v431_v60, %v431_v60  ;;  %v422_v5 = vpop.f32.mrb[14].mxu1  ;;  %v838_v6 = vpop.f32.mrb[15].mxu0 }
  0xfa   :  { %v440_v7 = vpack.c.bf16 %v432_v1, %v432_v1  ;;  %v846_v8 = vpop.f32.mrb[15].mxu1 }
  0xfb   :  { %v478_v9 = vunpack.c.l.b16 %v439_v4 }
  0xfc   :  { %v479_v10 = vunpack.c.l.b16 %v440_v7 }
  0xfd   :  { %v495_v11 = vrot.slane %v478_v9, 2 }
  0xfe   :  { %v498_v12 = vrot.slane %v479_v10, 1 }
  0xff   :  { %v497_v13 = vsel %vm496_vm7, %v495_v11, %v494_v63 }
 0x100   :  { %v500_v14 = vsel %vm499_vm8, %v498_v12, %v497_v13 }
 0x101   :  { %v501_v15 = vpack.c.b16 %v500_v14, %v500_v14 }
 0x103   :  { %864 = vmatmul.mubr.bf16.vlgmr.msra.gmra.mrb[16].mxu0 %v501_v15 }
 0x1d6   :  { %v585_v18 = vpop.f32.mrb[16].mxu0 }
 0x1d7   :  { %v586_v19 = vadd.f32 %v722_v17, %v585_v18  ;;  %v865_v20 = vpop.f32.mrb[17].mxu0 }
 0x1d8   :  { %v588_v21 = vpop.f32.mrb[18].mxu0 }
 0x1d9   :  { %v591_v22 = vpack.c.bf16 %v586_v19, %v586_v19  ;;  %v866_v23 = vpop.f32.mrb[19].mxu0 }
 0x1db   :  { %884 = vmatmul.mubr.bf16.vlgmr.msra.gmra.mrb[16].mxu1 %v591_v22 }
 0x2ae   :  { %v697_v25 = vpop.f32.mrb[16].mxu1 }
 0x2af   :  { %v698_v26 = vadd.f32 %v731_v24, %v697_v25  ;;  %v885_v0 = vpop.f32.mrb[17].mxu1 }
 0x2b0   :  { %v700_v27 = vpop.f32.mrb[18].mxu1 }
 0x2b1   :  { %v740_v28 = vmul.f32 -1.442695, %v698_v26  ;;  %v886_v29 = vpop.f32.mrb[19].mxu1 }
 0x2b3   :  { %905 = vpow2.f32 %v740_v28 }
 0x2bd   :  { %v906_v30 = vpop.eup %905 }
 0x2be   :  { %v706_v31 = vadd.f32 1.0, %v906_v30 }
 0x2c0   :  { %907 = vrcp.f32 %v706_v31 }
 0x2ca   :  { %v908_v32 = vpop.eup %907 }
 0x2cb   :  { %709 = vst [vmem:[%s1189_s6] sm:$0xff] %v908_v32 }

</bundles_post_ra>
